<compile_context>
chip_gen: v6e
topology: v6e:2x2x1
jax: 0.10.0
libtpu: 0.0.40
codegen_flags: <defaults>
</compile_context>

<pallas_src>
import jax
import jax.numpy as jnp
from jax.experimental import pallas as pl
from jax.experimental.pallas import tpu as pltpu  # noqa: F401  (kept for completeness)

HASH_SIZE = 8
HIGHFREQ_FACTOR = 4
IMG_SIZE = HASH_SIZE * HIGHFREQ_FACTOR            # 32
TORCH_PI = 3.1415927410125732                     # float32 pi constant used by the module
N_LOW = HASH_SIZE * HASH_SIZE                     # 64
MEDIAN_RANK = (N_LOW - 1) // 2 + 1                # 32 (strict-less count threshold)


# ----------------------------- Pallas kernel ----------------------------------

def _phash_kernel(g_ref, b_ref, o_ref):
    """g_ref: (8, 32)  top 8 rows of the 32x32 resized grayscale image (sample 0).
       b_ref: (32, 8)  DCT-II cosine basis, columns 0..7, pre-scaled by 4.0.
       o_ref: (1, 64)  int32 hash bits, row-major flattened (lane-dense).
    """
    # 8x8 low-frequency DCT block. Both torch dct passes (and their 2x factors) are folded
    # into the pre-scaled basis, so this is a single MXU matmul with no VPU scaling.
    d = jnp.dot(g_ref[...], b_ref[...], preferred_element_type=jnp.float32)   # (8, 8)

    # ---- build row-major flattened layouts of d in-register (no reshapes) ----
    # wide[p, n] = d[p, n % 8]   via a tiny matmul against a constant 0/1 selector.
    r8  = jax.lax.broadcasted_iota(jnp.int32, (8, N_LOW), 0)      # row index p / q'
    c64 = jax.lax.broadcasted_iota(jnp.int32, (8, N_LOW), 1)      # column index n
    rsel = (r8 == (c64 & 7)).astype(jnp.float32)                  # (8, 64): [q' == n%8]
    wide = jnp.dot(d, rsel, preferred_element_type=jnp.float32)   # (8, 64)
    # flat_row[0, 8i+j] = d[i, j]   (pick sublane n//8, then sublane-reduce)
    flat_row = jnp.sum(jnp.where(r8 == (c64 >> 3), wide, 0.0),
                       axis=0, keepdims=True)                     # (1, 64)

    # tall[m, q] = d[m // 8, q]
    r64 = jax.lax.broadcasted_iota(jnp.int32, (N_LOW, 8), 0)      # row index m
    c8  = jax.lax.broadcasted_iota(jnp.int32, (N_LOW, 8), 1)      # column index p / q
    lsel = (c8 == (r64 >> 3)).astype(jnp.float32)                 # (64, 8): [p == m//8]
    tall = jnp.dot(lsel, d, preferred_element_type=jnp.float32)   # (64, 8)
    # flat_col[8i+j, 0] = d[i, j]   (pick lane m%8, then lane-reduce)
    flat_col = jnp.sum(jnp.where(c8 == (r64 & 7), tall, 0.0),
                       axis=1, keepdims=True)                     # (64, 1)

    # ---- rank-count median threshold ----
    # counts[n] = #{ m : a[m] < a[n] };  a[n] > torch.median(a)  <=>  counts[n] >= 32.
    lt = (flat_col < flat_row).astype(jnp.float32)                # (64, 64)
    counts = jnp.sum(lt, axis=0, keepdims=True)                   # (1, 64) sublane reduce
    o_ref[...] = (counts >= float(MEDIAN_RANK)).astype(jnp.int32)


# ------------------------------- glue / wrapper --------------------------------

def _dct_basis(n):
    """C[w, k] = cos(pi * k * (2w + 1) / (2n)) with the module's pi constant."""
    w = jnp.arange(n, dtype=jnp.float32)
    k = jnp.arange(n, dtype=jnp.float32)
    return jnp.cos(TORCH_PI * k[None, :] * (2.0 * w[:, None] + 1.0) / (2.0 * n))


def _full_block(shape):
    return pl.BlockSpec(shape, lambda: (0,) * len(shape))


def _preprocess(x):
    """NCHW -> top 8 rows of the 32x32 resized grayscale of sample 0, shape (8, 32)."""
    x0 = x[0:1].astype(jnp.float32)                               # only sample 0 is ever used
    w = jnp.array([0.2989, 0.587, 0.114], dtype=jnp.float32)      # torchvision Grayscale weights
    gray = jnp.einsum('nchw,c->nhw', x0, w)[:, None]              # (1, 1, H, W)
    # TODO(synk): torchvision Resize's antialias behavior on downscale is version/flag
    #             dependent; jax.image.resize('bilinear') is used as-is here.
    resized = jax.image.resize(gray, (1, 1, IMG_SIZE, IMG_SIZE), method='bilinear')
    img = resized[0, 0]                                           # (32, 32) f32 == X.float()[0][0]
    return img[:HASH_SIZE, :]                                     # only rows feeding dctlowfreq


def phash_forward(x):
    """x: (N, 3, H, W) float32 NCHW (PyTorch convention). Returns (8, 8) bool."""
    g8 = _preprocess(x)                                            # (8, 32)
    basis = 4.0 * _dct_basis(IMG_SIZE)[:, :HASH_SIZE]              # (32, 8), 2*2 scale folded in

    mask_row = pl.pallas_call(
        _phash_kernel,
        out_shape=jax.ShapeDtypeStruct((1, N_LOW), jnp.int32),
        in_specs=[_full_block((HASH_SIZE, IMG_SIZE)),
                  _full_block((IMG_SIZE, HASH_SIZE))],
        out_specs=_full_block((1, N_LOW)),
    )(g8, basis)

    return mask_row.reshape(HASH_SIZE, HASH_SIZE).astype(jnp.bool_)


def phash_reference(x):
    """Pure-JAX reference mirroring the PyTorch forward (for the self-test)."""
    g8 = _preprocess(x)
    basis = 4.0 * _dct_basis(IMG_SIZE)[:, :HASH_SIZE]
    dctlow = jnp.einsum('hw,wk->hk', g8, basis,
                        precision=jax.lax.Precision.HIGHEST)       # (8, 8)
    med = jnp.sort(dctlow.reshape(-1))[(N_LOW - 1) // 2]           # torch.median: lower middle
    return dctlow > med


if __name__ == "__main__":
    key = jax.random.PRNGKey(0)
    # Small NCHW input (batch=2, channels=3, spatial=16); only sample [0] matters,
    # matching the module's `[0]` indexing after resize.
    x = jax.random.uniform(key, (2, 3, 16, 16), dtype=jnp.float32)

    out = jax.jit(phash_forward)(x)
    out = jax.block_until_ready(out)

    assert out.shape == (HASH_SIZE, HASH_SIZE), out.shape
    assert out.dtype == jnp.bool_, out.dtype

    ref = phash_reference(x)
    assert bool(jnp.array_equal(out, ref)), "Pallas pHash mask does not match JAX reference"

    print("KERNEL_OK")
</pallas_src>

<mosaic_0001>
module attributes {stable_mosaic.version = 11 : i64} {
  func.func @_phash_kernel(%arg0: memref<8x32xf32, #tpu.memory_space<vmem>>, %arg1: memref<32x8xf32, #tpu.memory_space<vmem>>, %arg2: memref<1x64xi32, #tpu.memory_space<vmem>>) attributes {dimension_semantics = [], scalar_prefetch = 0 : i64, scratch_operands = 0 : i64, tpu.core_type = #tpu.core_type<tc>} {
    %c0 = arith.constant 0 : index
    %c0_0 = arith.constant 0 : index
    %0 = vector.load %arg0[%c0, %c0_0] : memref<8x32xf32, #tpu.memory_space<vmem>>, vector<8x32xf32>
    %c0_1 = arith.constant 0 : index
    %c0_2 = arith.constant 0 : index
    %1 = vector.load %arg1[%c0_1, %c0_2] : memref<32x8xf32, #tpu.memory_space<vmem>>, vector<32x8xf32>
    %cst = arith.constant dense<0.000000e+00> : vector<8x8xf32>
    %2 = tpu.matmul %0, %1, %cst {dimension_numbers = #tpu.dot_dimension_numbers<[1], [0], [0], [1], [0, 0, 1, 1], [], []>} : vector<8x32xf32>, vector<32x8xf32>, vector<8x8xf32> -> vector<8x8xf32>
    %3 = tpu.iota {dimensions = array<i32: 0>} : vector<8x64xi32>
    %4 = tpu.iota {dimensions = array<i32: 1>} : vector<8x64xi32>
    %c7_i32 = arith.constant 7 : i32
    %5 = vector.broadcast %c7_i32 : i32 to vector<8x64xi32>
    %6 = arith.andi %4, %5 : vector<8x64xi32>
    %7 = arith.cmpi eq, %3, %6 : vector<8x64xi32>
    %8 = arith.extui %7 : vector<8x64xi1> to vector<8x64xi32>
    %9 = arith.sitofp %8 : vector<8x64xi32> to vector<8x64xf32>
    %cst_3 = arith.constant dense<0.000000e+00> : vector<8x64xf32>
    %10 = tpu.matmul %2, %9, %cst_3 {dimension_numbers = #tpu.dot_dimension_numbers<[1], [0], [0], [1], [0, 0, 1, 1], [], []>} : vector<8x8xf32>, vector<8x64xf32>, vector<8x64xf32> -> vector<8x64xf32>
    %c3_i32 = arith.constant 3 : i32
    %11 = vector.broadcast %c3_i32 : i32 to vector<8x64xi32>
    %12 = arith.shrsi %4, %11 : vector<8x64xi32>
    %13 = arith.cmpi eq, %3, %12 : vector<8x64xi32>
    %cst_4 = arith.constant 0.000000e+00 : f32
    %14 = vector.broadcast %cst_4 : f32 to vector<8x64xf32>
    %15 = arith.select %13, %10, %14 : vector<8x64xi1>, vector<8x64xf32>
    %cst_5 = arith.constant dense<0.000000e+00> : vector<64xf32>
    %16 = vector.multi_reduction <add>, %15, %cst_5 [0] : vector<8x64xf32> to vector<64xf32>
    %17 = vector.shape_cast %16 : vector<64xf32> to vector<1x64xf32>
    %18 = tpu.iota {dimensions = array<i32: 0>} : vector<64x8xi32>
    %19 = tpu.iota {dimensions = array<i32: 1>} : vector<64x8xi32>
    %c3_i32_6 = arith.constant 3 : i32
    %20 = vector.broadcast %c3_i32_6 : i32 to vector<64x8xi32>
    %21 = arith.shrsi %18, %20 : vector<64x8xi32>
    %22 = arith.cmpi eq, %19, %21 : vector<64x8xi32>
    %23 = arith.extui %22 : vector<64x8xi1> to vector<64x8xi32>
    %24 = arith.sitofp %23 : vector<64x8xi32> to vector<64x8xf32>
    %cst_7 = arith.constant dense<0.000000e+00> : vector<64x8xf32>
    %25 = tpu.matmul %24, %2, %cst_7 {dimension_numbers = #tpu.dot_dimension_numbers<[1], [0], [0], [1], [0, 0, 1, 1], [], []>} : vector<64x8xf32>, vector<8x8xf32>, vector<64x8xf32> -> vector<64x8xf32>
    %c7_i32_8 = arith.constant 7 : i32
    %26 = vector.broadcast %c7_i32_8 : i32 to vector<64x8xi32>
    %27 = arith.andi %18, %26 : vector<64x8xi32>
    %28 = arith.cmpi eq, %19, %27 : vector<64x8xi32>
    %cst_9 = arith.constant 0.000000e+00 : f32
    %29 = vector.broadcast %cst_9 : f32 to vector<64x8xf32>
    %30 = arith.select %28, %25, %29 : vector<64x8xi1>, vector<64x8xf32>
    %cst_10 = arith.constant dense<0.000000e+00> : vector<64xf32>
    %31 = vector.multi_reduction <add>, %30, %cst_10 [1] : vector<64x8xf32> to vector<64xf32>
    %32 = vector.shape_cast %31 : vector<64xf32> to vector<64x1xf32>
    %33 = vector.broadcast %32 : vector<64x1xf32> to vector<64x64xf32>
    %34 = vector.broadcast %17 : vector<1x64xf32> to vector<64x64xf32>
    %35 = arith.cmpf olt, %33, %34 : vector<64x64xf32>
    %36 = arith.extui %35 : vector<64x64xi1> to vector<64x64xi32>
    %37 = arith.sitofp %36 : vector<64x64xi32> to vector<64x64xf32>
    %cst_11 = arith.constant dense<0.000000e+00> : vector<64xf32>
    %38 = vector.multi_reduction <add>, %37, %cst_11 [0] : vector<64x64xf32> to vector<64xf32>
    %39 = vector.shape_cast %38 : vector<64xf32> to vector<1x64xf32>
    %cst_12 = arith.constant 3.200000e+01 : f32
    %40 = vector.broadcast %cst_12 : f32 to vector<1x64xf32>
    %41 = arith.cmpf oge, %39, %40 : vector<1x64xf32>
    %42 = arith.extui %41 : vector<1x64xi1> to vector<1x64xi32>
    %c0_13 = arith.constant 0 : index
    %c0_14 = arith.constant 0 : index
    %43 = vector.load %arg2[%c0_13, %c0_14] : memref<1x64xi32, #tpu.memory_space<vmem>>, vector<1x64xi32>
    tpu.vector_store %arg2[%c0_13, %c0_14], %42 {strides = array<i32>} : memref<1x64xi32, #tpu.memory_space<vmem>>, vector<1x64xi32>,
    return
  }
}

</mosaic_0001>

<bundles_post_ra>
// kernel: phash_forward.1
= control target key start
LH: loop header
LB: loop body
LE: loop exit
PB: predicated region body
PF: predicated region fallthrough
CT: control target
= control target key end

     0   :  { %v530_v0 = vmov 0.0   ;;  %vm531_vm0 = vmmov 0   ;;  %vm16_vm1 = vcmask 261120   ;;  %v90_v6 = vlaneseq  ;;  %s667_s1 = inlined_call_operand.vmem [shape: f32[32,8], index: 1, kind: input, shape index: {}]   ;;  %s668_s0 = inlined_call_operand.vmem [shape: f32[8,32], index: 0, kind: input, shape index: {}]   ;;  %s669_s2 = inlined_call_operand.vmem [shape: s32[1,64], index: 2, kind: output, shape index: {}]  }
   0x1   :  { %496 = vmatprep.subr.mxu0 %v530_v0  ;;  %v15_v1 = vld [vmem:[%s667_s1 + $0x18] sm:$0xff]  ;;  %v14_v2 = vld [vmem:[%s667_s1 + $0x10] sm:$0xff]  ;;  %504 = vmatprep.mubr.msk.f32.mxu0 %vm531_vm0, %v530_v0  ;;  %v13_v3 = vld [vmem:[%s667_s1 + $0x8] sm:$0xff]  ;;  %v532_v11 = vmov 1.0   ;;  %vm98_vm3 = vcmask 64512  }
   0x2   :  { %497 = vmatpush3.msra.mxu0 %v15_v1  ;;  %v12_v4 = vld [vmem:[%s667_s1] sm:$0xff]  ;;  %v573_v7 = vshrl.u32 %v90_v6, 7  ;;  %v575_v8 = vand.u32 127, %v90_v6 }
   0x3   :  { %498 = vmatprep.subr.mxu0 %v530_v0  ;;  %v11_v5 = vld [vmem:[%s668_s0] sm:$0xff] }
   0x4   :  { %499 = vmatpush3.msra.mxu0 %v14_v2  ;;  %v94_v9 = vand.u32 7, %v575_v8  ;;  %v190_v10 = vshra.s32 %v573_v7, 3  ;;  %v183_v13 = vadd.s32 8, %v573_v7  ;;  %v184_v14 = vadd.s32 16, %v573_v7 }
   0x5   :  { %500 = vmatprep.subr.mxu0 %v530_v0  ;;  %v185_v16 = vadd.s32 24, %v573_v7  ;;  %v186_v18 = vadd.s32 32, %v573_v7  ;;  %v187_v20 = vadd.s32 40, %v573_v7  ;;  %v591_v22 = vadd.s32 48, %v573_v7 }
   0x6   :  { %501 = vmatpush3.msra.mxu0 %v13_v3  ;;  %vm95_vm2 = vcmp.eq.s32.totalorder %v573_v7, %v94_v9  ;;  %vm198_vm4 = vcmp.eq.s32.totalorder %v575_v8, %v190_v10  ;;  %v191_v15 = vshra.s32 %v183_v13, 3  ;;  %v192_v17 = vshra.s32 %v184_v14, 3 }
   0x7   :  { %502 = vmatprep.subr.mxu0 %v530_v0  ;;  %v456_v12 = vsel %vm198_vm4, 1.0, %v530_v0  ;;  %v193_v19 = vshra.s32 %v185_v16, 3  ;;  %v194_v21 = vshra.s32 %v186_v18, 3  ;;  %v195_v26 = vshra.s32 %v187_v20, 3 }
   0x8   :  { %503 = vmatpush3.msra.mxu0 %v12_v4  ;;  %514 = vmatprep.mubr.msk.f32.mxu1 %vm98_vm3, %v456_v12  ;;  %vm199_vm5 = vcmp.eq.s32.totalorder %v575_v8, %v191_v15  ;;  %vm200_vm6 = vcmp.eq.s32.totalorder %v575_v8, %v192_v17  ;;  %v189_v27 = vadd.s32 56, %v573_v7  ;;  %v196_v29 = vshra.s32 %v591_v22, 3 }
   0x9   :  { %505 = vmatmul.mubr.msk.f32.vlgmr.msra.gmra.mxu0 %vm16_vm1, %v11_v5  ;;  %507 = vmatprep.subr.mxu0 %v530_v0  ;;  %v457_v24 = vsel %vm199_vm5, 1.0, %v530_v0  ;;  %v458_v25 = vsel %vm200_vm6, 1.0, %v530_v0  ;;  %vm201_vm7 = vcmp.eq.s32.totalorder %v575_v8, %v193_v19  ;;  %vm202_vm8 = vcmp.eq.s32.totalorder %v575_v8, %v194_v21 }
   0xa   :  { %509 = vmatprep.mubr.msk.f32.mxu0 %vm531_vm0, %v530_v0  ;;  %508 = vmatpush3.msk.msra.mxu0 %vm95_vm2, %v532_v11  ;;  %v459_v30 = vsel %vm201_vm7, 1.0, %v530_v0  ;;  %v460_v31 = vsel %vm202_vm8, 1.0, %v530_v0  ;;  %vm203_vm9 = vcmp.eq.s32.totalorder %v575_v8, %v195_v26  ;;  %v197_v32 = vshra.s32 %v189_v27, 3 }
   0xb   :  { %vm204_vm10 = vcmp.eq.s32.totalorder %v575_v8, %v196_v29  ;;  %v461_v33 = vsel %vm203_vm9, 1.0, %v530_v0  ;;  %v351_v36 = vand.u32 7, %v573_v7  ;;  %v352_v38 = vand.u32 7, %v183_v13 }
   0xc   :  { %v462_v34 = vsel %vm204_vm10, 1.0, %v530_v0  ;;  %vm205_vm11 = vcmp.eq.s32.totalorder %v575_v8, %v197_v32  ;;  %v353_v41 = vand.u32 7, %v184_v14  ;;  %v354_v44 = vand.u32 7, %v185_v16 }
   0xd   :  { %v463_v35 = vsel %vm205_vm11, 1.0, %v530_v0  ;;  %vm359_vm12 = vcmp.eq.s32.totalorder %v575_v8, %v351_v36  ;;  %vm618_vm13 = vcmp.eq.s32.totalorder %v575_v8, %v352_v38  ;;  %v355_v48 = vand.u32 7, %v186_v18 }
   0xe   :  { %vm361_vm14 = vcmp.eq.s32.totalorder %v575_v8, %v353_v41  ;;  %vm627_vm15 = vcmp.eq.s32.totalorder %v575_v8, %v354_v44  ;;  %v356_v52 = vand.u32 7, %v187_v20  ;;  %v357_v57 = vand.u32 7, %v591_v22 }
   0xf   :  { %vm363_vm0 = vcmp.eq.s32.totalorder %v575_v8, %v355_v48  ;;  %v358_v60 = vand.u32 7, %v189_v27  ;;  %v172_v11 = vshra.s32 %v575_v8, 3  ;;  %vm175_vm6 = vcmask 523264  }
  0x10   :  { %vm364_vm1 = vcmp.eq.s32.totalorder %v575_v8, %v356_v52  ;;  %vm365_vm2 = vcmp.eq.s32.totalorder %v575_v8, %v357_v57 }
  0x11   :  { %vm366_vm4 = vcmp.eq.s32.totalorder %v575_v8, %v358_v60  ;;  %vm173_vm5 = vcmp.eq.s32.totalorder %v573_v7, %v172_v11 }
  0xc9   :  { %v86_v23 = vpop.f32.mrf.mxu0 }
  0xca   :  { %510 = vmatmul.mubr.msk.f32.vlgmr.msra.gmra.mxu0 %vm98_vm3, %v86_v23  ;;  %512 = vmatprep.subr.mxu1 %v86_v23 }
  0xcb   :  { %v506_v28 = vpop.f32.mrf.mxu0  ;;  %513 = vmatpush3.msra.mxu1 %v86_v23 }
  0xcc   :  { %515 = vmatmul.mubr.msk.f32.vlgmr.msra.gmra.mxu1 %vm98_vm3, %v457_v24 }
  0xcd   :  { %517 = vmatprep.mubr.msk.f32.mxu1 %vm98_vm3, %v458_v25 }
  0xd0   :  { %518 = vmatmul.mubr.msk.f32.gmra.mxu1 %vm98_vm3, %v459_v30 }
  0xd1   :  { %520 = vmatprep.mubr.msk.f32.mxu1 %vm98_vm3, %v460_v31 }
  0xd4   :  { %521 = vmatmul.mubr.msk.f32.gmra.mxu1 %vm98_vm3, %v461_v33 }
  0xd5   :  { %523 = vmatprep.mubr.msk.f32.mxu1 %vm98_vm3, %v462_v34 }
  0xd8   :  { %524 = vmatmul.mubr.msk.f32.gmra.mxu1 %vm98_vm3, %v463_v35 }
 0x18a   :  { %v168_v37 = vpop.f32.mrf.mxu0 }
 0x18b   :  { %v174_v12 = vsel %vm173_vm5, %v168_v37, 0.0 }
 0x18c   :  { %v511_v39 = vpop.f32.mrf.mxu0  ;;  %v516_v40 = vpop.f32.mrf.mxu1  ;;  %v176_v13 = vsel %vm175_vm6, %v174_v12, 0.0 }
 0x18d   :  { %v368_v49 = vsel %vm618_vm13, %v516_v40, 0.0  ;;  %v177_v14 = vrot.slane %v176_v13, 4 }
 0x18e   :  { %v312_v43 = vpop.f32.mrf.mxu1  ;;  %v378_v55 = vsel %vm98_vm3, %v368_v49, 0.0 }
 0x18f   :  { %v367_v45 = vsel %vm359_vm12, %v312_v43, 0.0  ;;  %v178_v15 = vadd.f32 %v177_v14, %v176_v13 }
 0x190   :  { %v519_v46 = vpop.f32.mrf.mxu1  ;;  %v375_v47 = vsel %vm98_vm3, %v367_v45, 0.0 }
 0x191   :  { %376 = vadd.xlane.f32.xlu0 %v375_v47  ;;  %v370_v58 = vsel %vm627_vm15, %v519_v46, 0.0  ;;  %v179_v16 = vrot.slane %v178_v15, 2 }
 0x192   :  { %v322_v51 = vpop.f32.mrf.mxu1  ;;  %v384_v63 = vsel %vm98_vm3, %v370_v58, 0.0 }
 0x193   :  { %v369_v53 = vsel %vm361_vm14, %v322_v51, 0.0  ;;  %v180_v17 = vadd.f32 %v179_v16, %v178_v15  ;;  %vm446_vm14 = vcmask 516096  }
 0x194   :  { %v522_v54 = vpop.f32.mrf.mxu1  ;;  %v381_v56 = vsel %vm98_vm3, %v369_v53, 0.0 }
 0x195   :  { %379 = vadd.xlane.f32.xlu0 %v378_v55  ;;  %382 = vadd.xlane.f32.xlu1 %v381_v56  ;;  %v372_v2 = vsel %vm364_vm1, %v522_v54, 0.0  ;;  %v181_v18 = vrot.slane %v180_v17, 1  ;;  %v533_v55 = vmov 0  }
 0x196   :  { %v332_v59 = vpop.f32.mrf.mxu1  ;;  %v390_v5 = vsel %vm98_vm3, %v372_v2, 0.0 }
 0x197   :  { %v371_v61 = vsel %vm363_vm0, %v332_v59, 0.0  ;;  %v182_v19 = vadd.f32 %v181_v18, %v180_v17 }
 0x198   :  { %v525_v62 = vpop.f32.mrf.mxu1  ;;  %v387_v1 = vsel %vm98_vm3, %v371_v61, 0.0 }
 0x199   :  { %385 = vadd.xlane.f32.xlu1 %v384_v63  ;;  %388 = vadd.xlane.f32.xlu0 %v387_v1  ;;  %v374_v9 = vsel %vm366_vm4, %v525_v62, 0.0 }
 0x19a   :  { %v342_v3 = vpop.f32.mrf.mxu1  ;;  %v396_v10 = vsel %vm98_vm3, %v374_v9, 0.0 }
 0x19b   :  { %v373_v4 = vsel %vm365_vm2, %v342_v3, 0.0 }
 0x19c   :  { %v393_v6 = vsel %vm98_vm3, %v373_v4, 0.0 }
 0x19d   :  { %391 = vadd.xlane.f32.xlu1 %v390_v5  ;;  %394 = vadd.xlane.f32.xlu0 %v393_v6 }
 0x1a1   :  { %397 = vadd.xlane.f32.xlu1 %v396_v10 }
 0x21a   :  { %v377_v20 = vpop.xlane.xlu0 %376 }
 0x21b   :  { %vm399_vm7 = vcmp.lt.f32.partialorder %v377_v20, %v182_v19 }
 0x21c   :  { %v472_v21 = vsel %vm399_vm7, 1.0, %v530_v0 }
 0x21d   :  { %v423_v24 = vsel %vm175_vm6, %v472_v21, 0.0 }
 0x21e   :  { %v380_v22 = vpop.xlane.xlu0 %379  ;;  %v383_v23 = vpop.xlane.xlu1 %382 }
 0x21f   :  { %vm400_vm3 = vcmp.lt.f32.partialorder %v380_v22, %v182_v19  ;;  %vm401_vm8 = vcmp.lt.f32.partialorder %v383_v23, %v182_v19 }
 0x220   :  { %v473_v7 = vsel %vm400_vm3, 1.0, %v530_v0  ;;  %v474_v8 = vsel %vm401_vm8, 1.0, %v530_v0 }
 0x221   :  { %v424_v25 = vsel %vm175_vm6, %v473_v7, 0.0  ;;  %v426_v29 = vsel %vm175_vm6, %v474_v8, 0.0 }
 0x222   :  { %v425_v26 = vadd.f32 %v424_v25, %v423_v24  ;;  %v386_v27 = vpop.xlane.xlu1 %385  ;;  %v389_v28 = vpop.xlane.xlu0 %388 }
 0x223   :  { %vm402_vm9 = vcmp.lt.f32.partialorder %v386_v27, %v182_v19  ;;  %vm403_vm10 = vcmp.lt.f32.partialorder %v389_v28, %v182_v19 }
 0x224   :  { %v427_v30 = vadd.f32 %v426_v29, %v425_v26  ;;  %v475_v31 = vsel %vm402_vm9, 1.0, %v530_v0  ;;  %v476_v32 = vsel %vm403_vm10, 1.0, %v530_v0 }
 0x225   :  { %v428_v33 = vsel %vm175_vm6, %v475_v31, 0.0  ;;  %v430_v37 = vsel %vm175_vm6, %v476_v32, 0.0 }
 0x226   :  { %v429_v34 = vadd.f32 %v428_v33, %v427_v30  ;;  %v392_v35 = vpop.xlane.xlu1 %391  ;;  %v395_v36 = vpop.xlane.xlu0 %394 }
 0x227   :  { %vm404_vm11 = vcmp.lt.f32.partialorder %v392_v35, %v182_v19  ;;  %vm405_vm12 = vcmp.lt.f32.partialorder %v395_v36, %v182_v19 }
 0x228   :  { %v431_v38 = vadd.f32 %v430_v37, %v429_v34  ;;  %v477_v39 = vsel %vm404_vm11, 1.0, %v530_v0  ;;  %v478_v40 = vsel %vm405_vm12, 1.0, %v530_v0 }
 0x229   :  { %v432_v41 = vsel %vm175_vm6, %v477_v39, 0.0  ;;  %v434_v44 = vsel %vm175_vm6, %v478_v40, 0.0 }
 0x22a   :  { %v433_v42 = vadd.f32 %v432_v41, %v431_v38  ;;  %v398_v43 = vpop.xlane.xlu1 %397 }
 0x22b   :  { %vm406_vm13 = vcmp.lt.f32.partialorder %v398_v43, %v182_v19 }
 0x22c   :  { %v435_v45 = vadd.f32 %v434_v44, %v433_v42  ;;  %v479_v46 = vsel %vm406_vm13, 1.0, %v530_v0 }
 0x22d   :  { %v436_v47 = vsel %vm175_vm6, %v479_v46, 0.0 }
 0x22e   :  { %v437_v48 = vadd.f32 %v436_v47, %v435_v45 }
 0x230   :  { %v438_v49 = vrot.slane %v437_v48, 4 }
 0x232   :  { %v439_v50 = vadd.f32 %v438_v49, %v437_v48 }
 0x234   :  { %v440_v51 = vrot.slane %v439_v50, 2 }
 0x236   :  { %v441_v52 = vadd.f32 %v440_v51, %v439_v50 }
 0x238   :  { %v442_v53 = vrot.slane %v441_v52, 1 }
 0x23a   :  { %v443_v54 = vadd.f32 %v442_v53, %v441_v52 }
 0x23c   :  { %vm444_vm15 = vcmp.ge.f32.partialorder %v443_v54, 32.0 }
 0x23d   :  { %v445_v56 = vsel %vm444_vm15, 1, %v533_v55 }
 0x23e   :  { %447 = vst.msk [vmem:[%s669_s2] sm:$0x1] %vm446_vm14, %v445_v56 }

</bundles_post_ra>
